<compile_context>
chip_gen: v7x
topology: tpu7x:2x2x1
jax: 0.10.0
libtpu: 0.0.40
codegen_flags: <defaults>
</compile_context>

<pallas_src>
import functools

import jax
import jax.numpy as jnp
from jax import lax
from jax.experimental import pallas as pl
from jax.experimental.pallas import tpu as pltpu


def _round_up(v, m):
    return (v + m - 1) // m * m


def _vmem_capacity_bytes():
    """Per-TensorCore VMEM capacity; conservative 64 MiB (v7x) fallback."""
    default = 64 * 1024 * 1024
    try:
        info = pltpu.get_tpu_info()
        cap = getattr(info, "vmem_capacity_bytes", None)
        return int(cap) if cap else default
    except Exception:
        return default


def _style_loss_kernel(x_ref, y_ref, o_ref, acc_ref, *,
                       inv_gram_div, hw, tile_k, mxu_dtype):
    """One (batch, k) grid step: accumulate A += S @ D^T, finalize at last k."""
    k = pl.program_id(1)

    @pl.when(k == 0)
    def _():
        acc_ref[...] = jnp.zeros_like(acc_ref)

    # Form s = x + y and d = x - y in f32 on the VPU (free filler under an
    # MXU-bound loop).  Doing the subtraction BEFORE any bf16 down-cast avoids
    # cancellation when x ~= y (late in style-transfer optimization).
    xf = x_ref[...].astype(jnp.float32)   # (C, tile_k)
    yf = y_ref[...].astype(jnp.float32)
    s = xf + yf
    d = xf - yf

    if hw % tile_k != 0:
        # Ragged last HW tile: Pallas pads out-of-bounds block columns with
        # unspecified data, so zero them before they reach the MXU.
        col = lax.broadcasted_iota(jnp.int32, s.shape, 1)
        valid = hw - k * tile_k
        keep = col < valid
        s = jnp.where(keep, s, 0.0)
        d = jnp.where(keep, d, 0.0)

    s = s.astype(mxu_dtype)
    d = d.astype(mxu_dtype)

    # A += S @ D^T  (contract the HW axis of both operands, f32 accumulation).
    # sym(A) = Gram(x) - Gram(y), so one matmul replaces the two Gram matmuls.
    dn = (((1,), (1,)), ((), ()))
    acc_ref[...] += lax.dot_general(s, d, dn, preferred_element_type=jnp.float32)

    @pl.when(k == pl.num_programs(1) - 1)
    def _():
        c = acc_ref.shape[0]
        # Scale BEFORE squaring: lower f32 overflow exposure, zero perf cost.
        a = acc_ref[...] * inv_gram_div
        sum_aa = jnp.sum(a * a)                                   # sum(A∘A)
        # sum(A∘A^T) = trace(A @ A): tiny per-batch matmul, no standalone
        # transpose needed.
        aa = lax.dot_general(a, a, (((1,), (0,)), ((), ())),
                             preferred_element_type=jnp.float32)
        row = lax.broadcasted_iota(jnp.int32, (c, c), 0)
        col = lax.broadcasted_iota(jnp.int32, (c, c), 1)
        tr_aa = jnp.sum(jnp.where(row == col, aa, 0.0))           # sum(A∘A^T)
        partial = 0.5 * (sum_aa + tr_aa)   # = sum((Gram(x)-Gram(y))^2) for batch b
        # Lane-dense per-batch output tile (unmasked full-tile store).
        o_ref[...] = jnp.zeros(o_ref.shape, jnp.float32) + partial


def style_loss(x, y, *, mxu_dtype=jnp.bfloat16, tk=None):
    """Pallas equivalent of StyleLoss.forward(x, y); x, y are [B, C, H, W].

    mxu_dtype: dtype of the MXU operands (default bf16 = MXU-native; use
               jnp.float32 for bit-faithful f32 math).  Accumulation is f32.
    tk:        override the HW tile size (rounded to a multiple of 128).
    """
    assert x.shape == y.shape, "x and y must have the same shape"
    assert x.dtype == y.dtype, "x and y must have the same dtype"
    B, C, H, W = x.shape
    HW = H * W
    itemsize = jnp.dtype(x.dtype).itemsize

    # ---- per-TensorCore VMEM budget, scratch-aware -------------------------
    cap = _vmem_capacity_bytes()
    vmem_limit = max(8 << 20, min(int(cap * 0.85), cap - (8 << 20)))

    sublane = max(8, 32 // max(itemsize, 1))          # 8 (f32) / 16 (bf16) rows
    rows_pad = _round_up(C, sublane)                  # padded input-block rows
    scratch_bytes = _round_up(C, 8) * _round_up(C, 128) * 4   # one f32 (C,C) acc
    out_bytes = 2 * 8 * 128 * 4                                # dbl-buffered out
    input_budget = int(0.8 * (vmem_limit - scratch_bytes - out_bytes))
    input_budget = max(input_budget, 2 * 2 * rows_pad * itemsize * 128)

    if tk is None:
        tk_cand = input_budget // (2 * 2 * rows_pad * itemsize)  # 2 in x 2 bufs
        tk_cand = max(128, (tk_cand // 128) * 128)
    else:
        tk_cand = max(128, _round_up(int(tk), 128))

    if tk_cand >= HW:
        tile_k = HW            # block == full dim: one K step, no masking
        num_k = 1
    else:
        num_k = pl.cdiv(HW, tk_cand)
        tile_k = min(_round_up(pl.cdiv(HW, num_k), 128), tk_cand)  # balance tiles
        num_k = pl.cdiv(HW, tile_k)

    # Triple-buffer the inputs only when K steps are short and numerous.
    use_extra_buffer = (
        num_k >= 8 and tile_k <= 512 and
        (2 * 3 * rows_pad * tile_k * itemsize + scratch_bytes + out_bytes)
        <= vmem_limit)

    # ---- wrapper prep: just a free reshape (no pad, no cast pass) ----------
    xf = x.reshape(B, C, HW)
    yf = y.reshape(B, C, HW)

    inv_gram_div = 1.0 / float(C * H * W)    # gram.div(C*H*W)
    kernel = functools.partial(_style_loss_kernel, inv_gram_div=inv_gram_div,
                               hw=HW, tile_k=tile_k, mxu_dtype=mxu_dtype)

    spec_kwargs = {}
    if use_extra_buffer:
        spec_kwargs["pipeline_mode"] = pl.Buffered(3)
    in_block = (pl.Squeezed(), C, tile_k)
    in_specs = [
        pl.BlockSpec(in_block, lambda b, k: (b, 0, k), **spec_kwargs),
        pl.BlockSpec(in_block, lambda b, k: (b, 0, k), **spec_kwargs),
    ]

    cost = pl.CostEstimate(
        flops=2 * B * C * C * num_k * tile_k,
        transcendentals=0,
        bytes_accessed=2 * B * C * HW * itemsize + B * 8 * 128 * 4,
    )

    out = pl.pallas_call(
        kernel,
        out_shape=jax.ShapeDtypeStruct((B, 8, 128), jnp.float32),
        grid_spec=pltpu.PrefetchScalarGridSpec(
            num_scalar_prefetch=0,
            grid=(B, num_k),
            in_specs=in_specs,
            out_specs=pl.BlockSpec((pl.Squeezed(), 8, 128),
                                   lambda b, k: (b, 0, 0)),
            scratch_shapes=[
                pltpu.VMEM((C, C), jnp.float32),   # A = S @ D^T accumulator
            ],
        ),
        compiler_params=pltpu.CompilerParams(
            # Batch axis = independent per-batch work -> shard across the two
            # v7x TensorCores; the HW (k) axis is the reduction -> arbitrary.
            dimension_semantics=("parallel", "arbitrary"),
            vmem_limit_bytes=int(vmem_limit),
        ),
        cost_estimate=cost,
    )(xf, yf)

    per_batch = out[:, 0, 0]   # one sum((Gx-Gy)^2) per batch
    # MSE mean over the (B, C, C) Gram-difference tensor.
    return jnp.sum(per_batch) * (1.0 / float(B * C * C))


def _style_loss_ref(x, y):
    B, C, H, W = x.shape
    xf = x.reshape(B, C, H * W)
    yf = y.reshape(B, C, H * W)
    gx = jnp.einsum("bik,bjk->bij", xf, xf) / (C * H * W)
    gy = jnp.einsum("bik,bjk->bij", yf, yf) / (C * H * W)
    return jnp.mean((gx - gy) ** 2)


if __name__ == "__main__":
    key = jax.random.PRNGKey(0)
    k1, k2, k3, k4 = jax.random.split(key, 4)

    # ---- shape 1: HW divides the forced tile evenly ------------------------
    B, C, H, W = 2, 4, 16, 16
    x = jax.random.normal(k1, (B, C, H, W), dtype=jnp.float32)
    y = jax.random.normal(k2, (B, C, H, W), dtype=jnp.float32)
    ref = jax.block_until_ready(_style_loss_ref(x, y))

    # f32 MXU operands, single K step (tile_k == HW).
    out_f32 = jax.block_until_ready(style_loss(x, y, mxu_dtype=jnp.float32))
    assert jnp.allclose(out_f32, ref, rtol=5e-3, atol=1e-7), (out_f32, ref)

    # Default bf16 MXU path (fast path): looser tolerance.
    out_bf16 = jax.block_until_ready(style_loss(x, y))
    assert jnp.allclose(out_bf16, ref, rtol=5e-2, atol=1e-5), (out_bf16, ref)

    # Multiple K steps (tk=128 -> 2 even tiles): must match the single-step run.
    out_f32_k = jax.block_until_ready(style_loss(x, y, mxu_dtype=jnp.float32, tk=128))
    assert jnp.allclose(out_f32_k, ref, rtol=5e-3, atol=1e-7), (out_f32_k, ref)
    assert jnp.allclose(out_f32_k, out_f32, rtol=1e-5, atol=1e-9), (out_f32_k, out_f32)

    # ---- shape 2: ragged HW (180) and non-multiple-of-8 C (5) --------------
    B2, C2, H2, W2 = 2, 5, 12, 15
    x2 = jax.random.normal(k3, (B2, C2, H2, W2), dtype=jnp.float32)
    y2 = jax.random.normal(k4, (B2, C2, H2, W2), dtype=jnp.float32)
    ref2 = jax.block_until_ready(_style_loss_ref(x2, y2))

    out2_full = jax.block_until_ready(style_loss(x2, y2, mxu_dtype=jnp.float32))
    assert jnp.allclose(out2_full, ref2, rtol=5e-3, atol=1e-7), (out2_full, ref2)

    # tk=128 over HW=180 -> 2 tiles, ragged last tile exercises in-kernel masking.
    out2_tiled = jax.block_until_ready(style_loss(x2, y2, mxu_dtype=jnp.float32, tk=128))
    assert jnp.allclose(out2_tiled, ref2, rtol=5e-3, atol=1e-7), (out2_tiled, ref2)
    assert jnp.allclose(out2_tiled, out2_full, rtol=1e-5, atol=1e-9), (out2_tiled, out2_full)

    out2_bf16 = jax.block_until_ready(style_loss(x2, y2, tk=128))
    assert jnp.allclose(out2_bf16, ref2, rtol=5e-2, atol=1e-5), (out2_bf16, ref2)

    print("KERNEL_OK")
</pallas_src>

<mosaic_0001>
module attributes {stable_mosaic.version = 11 : i64} {
  func.func @_style_loss_kernel(%arg0: i32, %arg1: i32, %arg2: memref<1x4x256xf32, #tpu.memory_space<vmem>>, %arg3: memref<1x4x256xf32, #tpu.memory_space<vmem>>, %arg4: memref<1x8x128xf32, #tpu.memory_space<vmem>>, %arg5: memref<4x4xf32, #tpu.memory_space<vmem>>) attributes {dimension_semantics = [#tpu.dimension_semantics<parallel>, #tpu.dimension_semantics<arbitrary>], iteration_bounds = array<i64: 2, 1>, scalar_prefetch = 0 : i64, scratch_operands = 1 : i64, tpu.core_type = #tpu.core_type<tc>, window_params = [{transform_indices = @transform_0, window_bounds = array<i64: 1, 4, 256>}, {transform_indices = @transform_1, window_bounds = array<i64: 1, 4, 256>}, {transform_indices = @transform_2, window_bounds = array<i64: 1, 8, 128>}]} {
    %c0_i32 = arith.constant 0 : i32
    %0 = arith.cmpi eq, %arg1, %c0_i32 : i32
    %1 = arith.extui %0 : i1 to i32
    %c0_i32_0 = arith.constant 0 : i32
    %2 = arith.cmpi ne, %1, %c0_i32_0 : i32
    scf.if %2 {
      %cst_12 = arith.constant 0.000000e+00 : f32
      %16 = vector.broadcast %cst_12 : f32 to vector<4x4xf32>
      %c0_13 = arith.constant 0 : index
      %c0_14 = arith.constant 0 : index
      %17 = vector.load %arg5[%c0_13, %c0_14] : memref<4x4xf32, #tpu.memory_space<vmem>>, vector<4x4xf32>
      tpu.vector_store %arg5[%c0_13, %c0_14], %16 {strides = array<i32>} : memref<4x4xf32, #tpu.memory_space<vmem>>, vector<4x4xf32>,
    } else {
    }
    %c0 = arith.constant 0 : index
    %c0_1 = arith.constant 0 : index
    %c0_2 = arith.constant 0 : index
    %3 = vector.load %arg2[%c0, %c0_1, %c0_2] : memref<1x4x256xf32, #tpu.memory_space<vmem>>, vector<1x4x256xf32>
    %4 = vector.shape_cast %3 : vector<1x4x256xf32> to vector<4x256xf32>
    %c0_3 = arith.constant 0 : index
    %c0_4 = arith.constant 0 : index
    %c0_5 = arith.constant 0 : index
    %5 = vector.load %arg3[%c0_3, %c0_4, %c0_5] : memref<1x4x256xf32, #tpu.memory_space<vmem>>, vector<1x4x256xf32>
    %6 = vector.shape_cast %5 : vector<1x4x256xf32> to vector<4x256xf32>
    %7 = arith.addf %4, %6 : vector<4x256xf32>
    %8 = arith.subf %4, %6 : vector<4x256xf32>
    %c0_6 = arith.constant 0 : index
    %c0_7 = arith.constant 0 : index
    %9 = vector.load %arg5[%c0_6, %c0_7] : memref<4x4xf32, #tpu.memory_space<vmem>>, vector<4x4xf32>
    %cst = arith.constant dense<0.000000e+00> : vector<4x4xf32>
    %10 = tpu.matmul %7, %8, %cst {dimension_numbers = #tpu.dot_dimension_numbers<[1], [1], [0], [0], [0, 0, 1, 0], [], []>} : vector<4x256xf32>, vector<4x256xf32>, vector<4x4xf32> -> vector<4x4xf32>
    %11 = arith.addf %9, %10 : vector<4x4xf32>
    %c0_8 = arith.constant 0 : index
    %c0_9 = arith.constant 0 : index
    %12 = vector.load %arg5[%c0_8, %c0_9] : memref<4x4xf32, #tpu.memory_space<vmem>>, vector<4x4xf32>
    tpu.vector_store %arg5[%c0_8, %c0_9], %11 {strides = array<i32>} : memref<4x4xf32, #tpu.memory_space<vmem>>, vector<4x4xf32>,
    %c0_i32_10 = arith.constant 0 : i32
    %13 = arith.cmpi eq, %arg1, %c0_i32_10 : i32
    %14 = arith.extui %13 : i1 to i32
    %c0_i32_11 = arith.constant 0 : i32
    %15 = arith.cmpi ne, %14, %c0_i32_11 : i32
    scf.if %15 {
      %c0_12 = arith.constant 0 : index
      %c0_13 = arith.constant 0 : index
      %16 = vector.load %arg5[%c0_12, %c0_13] : memref<4x4xf32, #tpu.memory_space<vmem>>, vector<4x4xf32>
      %cst_14 = arith.constant 9.765625E-4 : f32
      %17 = vector.broadcast %cst_14 : f32 to vector<4x4xf32>
      %18 = arith.mulf %16, %17 : vector<4x4xf32>
      %19 = arith.mulf %18, %18 : vector<4x4xf32>
      %20 = vector.shape_cast %19 : vector<4x4xf32> to vector<1x4x4xf32>
      %cst_15 = arith.constant dense<0.000000e+00> : vector<1xf32>
      %21 = vector.multi_reduction <add>, %20, %cst_15 [1, 2] : vector<1x4x4xf32> to vector<1xf32>
      %22 = vector.shape_cast %21 : vector<1xf32> to vector<1x1x1xf32>
      %23 = vector.extract %22[0, 0, 0] : f32 from vector<1x1x1xf32>
      %cst_16 = arith.constant dense<0.000000e+00> : vector<4x4xf32>
      %24 = tpu.matmul %18, %18, %cst_16 {dimension_numbers = #tpu.dot_dimension_numbers<[1], [0], [0], [1], [0, 0, 1, 1], [], []>} : vector<4x4xf32>, vector<4x4xf32>, vector<4x4xf32> -> vector<4x4xf32>
      %25 = tpu.iota {dimensions = array<i32: 0>} : vector<4x4xi32>
      %26 = tpu.iota {dimensions = array<i32: 1>} : vector<4x4xi32>
      %27 = arith.cmpi eq, %25, %26 : vector<4x4xi32>
      %cst_17 = arith.constant 0.000000e+00 : f32
      %28 = vector.broadcast %cst_17 : f32 to vector<4x4xf32>
      %29 = arith.select %27, %24, %28 : vector<4x4xi1>, vector<4x4xf32>
      %30 = vector.shape_cast %29 : vector<4x4xf32> to vector<1x4x4xf32>
      %cst_18 = arith.constant dense<0.000000e+00> : vector<1xf32>
      %31 = vector.multi_reduction <add>, %30, %cst_18 [1, 2] : vector<1x4x4xf32> to vector<1xf32>
      %32 = vector.shape_cast %31 : vector<1xf32> to vector<1x1x1xf32>
      %33 = vector.extract %32[0, 0, 0] : f32 from vector<1x1x1xf32>
      %34 = arith.addf %23, %33 : f32
      %cst_19 = arith.constant 5.000000e-01 : f32
      %35 = arith.mulf %cst_19, %34 : f32
      %cst_20 = arith.constant 0.000000e+00 : f32
      %36 = vector.broadcast %cst_20 : f32 to vector<8x128xf32>
      %37 = vector.broadcast %35 : f32 to vector<8x128xf32>
      %38 = arith.addf %36, %37 : vector<8x128xf32>
      %c0_21 = arith.constant 0 : index
      %c0_22 = arith.constant 0 : index
      %c0_23 = arith.constant 0 : index
      %39 = vector.load %arg4[%c0_21, %c0_22, %c0_23] : memref<1x8x128xf32, #tpu.memory_space<vmem>>, vector<1x8x128xf32>
      %40 = vector.shape_cast %39 : vector<1x8x128xf32> to vector<8x128xf32>
      %41 = vector.shape_cast %38 : vector<8x128xf32> to vector<1x8x128xf32>
      tpu.vector_store %arg4[%c0_21, %c0_22, %c0_23], %41 {strides = array<i32>} : memref<1x8x128xf32, #tpu.memory_space<vmem>>, vector<1x8x128xf32>,
    } else {
    }
    return
  }
  func.func @transform_0(%arg0: i32, %arg1: i32) -> (i32, i32, i32) {
    %c0_i32 = arith.constant 0 : i32
    %c0_i32_0 = arith.constant 0 : i32
    return %arg0, %c0_i32, %arg1 : i32, i32, i32
  }
  func.func @transform_1(%arg0: i32, %arg1: i32) -> (i32, i32, i32) {
    %c0_i32 = arith.constant 0 : i32
    %c0_i32_0 = arith.constant 0 : i32
    return %arg0, %c0_i32, %arg1 : i32, i32, i32
  }
  func.func @transform_2(%arg0: i32, %arg1: i32) -> (i32, i32, i32) {
    %c0_i32 = arith.constant 0 : i32
    %c0_i32_0 = arith.constant 0 : i32
    %c0_i32_1 = arith.constant 0 : i32
    return %arg0, %c0_i32, %c0_i32_0 : i32, i32, i32
  }
}

</mosaic_0001>

<bundles_post_ra>
// kernel: tpu_custom_call.1
= control target key start
LH: loop header
LB: loop body
LE: loop exit
PB: predicated region body
PF: predicated region fallthrough
CT: control target
= control target key end

     0   :  { %7 = vsyncpa [#allocation4], 0  ;;  %s1044_s0 = inlined_call_operand.hbm [shape: f32[2,4,256], index: 0, kind: input, shape index: {}]   ;;  %s1045_s1 = inlined_call_operand.hbm [shape: f32[2,4,256], index: 1, kind: input, shape index: {}]   ;;  %s1046_s2 = inlined_call_operand.hbm [shape: f32[2,8,128], index: 2, kind: output, shape index: {}]  }
   0x1   :  { %9 = vsyncpa [#allocation4 + $0x1], 0 }
   0x2   :  { %10 = vsyncpa [#allocation7], 0 }
   0x3   :  { %12 = vsyncpa [#allocation7 + $0x1], 0 }
   0x4   :  { %13 = vsyncpa [#allocation5], 0 }
   0x5   :  { %15 = vsyncpa [#allocation5 + $0x1], 0  ;;  %s815_s9 = smov 0   ;;  %s817_s10 = smov 0  }
   0x6   :  { %s819_s11 = smov 0   ;;  %s821_s12 = smov 0  }
   0x7   :  { %s823_s13 = smov 0   ;;  %s825_s14 = smov 0  }
   0x8 LB: > { %s545_s15 = sadd.s32 4294967295, %s793_s14   ;;  %s546_s16 = sadd.s32 4294967294, %s793_s14   ;;  %s793_s14 = sphi %s825_s14, %s21_s14   ;;  %s789_s13 = sphi %s823_s13, %s1066_s13   ;;  %s785_s12 = sphi %s821_s12, %s1065_s12   ;;  %s781_s11 = sphi %s819_s11, %s1064_s11   ;;  %s777_s10 = sphi %s817_s10, %s1063_s10   ;;  %s773_s9 = sphi %s815_s9, %s1062_s9  }
   0x9   : > { %s33_s17 = sadd.s32 1, %s789_s13  ;;  %s42_s18 = sadd.s32 1, %s781_s11 }
   0xa   : > { %p35_p0 = scmp.ge.s32.totalorder %s33_s17, 2  ;;  %p49_p1 = scmp.ne.s32.totalorder %s781_s11, %s777_s10 }
   0xb   : > { %p50_p2 = scmp.eq.s32.totalorder %s793_s14, 0  ;;  %p55_p3 = scmp.ne.s32.totalorder %s777_s10, %s773_s9 }
   0xc   : > { %s1068_s17 = smov (%p35_p0, %s33_s17), 0  ;;  %p56_p5 = scmp.eq.s32.totalorder %s545_s15, 0 }
   0xd   : > { %p856_p4 = por %p50_p2, %p49_p1  ;;  %s37_s20 = ssub.s32 %s789_s13, %s1068_s17 }
   0xe   : > { %p107_p6 = scmp.eq.s32.totalorder %s545_s15, 1  ;;  %p40_p7 = scmp.eq.s32.totalorder %s37_s20, 0 }
   0xf   : > { %p862_p8 = por %p56_p5, %p55_p3  ;;  %p113_p10 = scmp.eq.s32.totalorder %s546_s16, 1 }
  0x10   : > { %p866_p9 = por %p107_p6, %p49_p1  ;;  %p595_p13 = scmp.lt.s32.totalorder %s793_s14, 2 }
  0x11   : > { %s1050_s21 = scalar_select %p862_p8, 1, 0 }
  0x12   : > { %s1051_s22 = scalar_select %p866_p9, 1, 0 }
  0x13   : > { %s871_s23 = scalar_select %p40_p7, %s781_s11, %s42_s18  }
  0x14   : > { %p873_p11 = por %p113_p10, %p55_p3  ;;  %s880_s25 = sand.u32 1, %s781_s11  }
  0x15   : > { %s549_s26 = sshll.u32 %s880_s25, 3  ;;  %s565_s27 = sshll.u32 %s789_s13, 7 }
  0x16   : > { %s1052_s24 = scalar_select %p873_p11, 1, 0 }
  0x17   : > { %s889_s30 = scalar_lea.hbm %s1044_s0, %s565_s27  ;;  %s137_s3 = scalar_lea.vmem [#allocation3], %s549_s26 }
  0x18   : > { %s147_s4 = sshll.u32 %s137_s3, 4  ;;  %p897_p0 = pnand %p595_p13, %p856_p4  ;;  %s893_s4 = int_to_ptr.vmem [resolvable:$true] %s147_s4 }
  0x19   : > { %s134_s6 = scalar_lea.sflag [#allocation4], %s880_s25  ;;  %s647_s7 = scalar_lea.hbm %s889_s30, 128 }
  0x1a   : > { %p648_p3 = scmp.ne.s32.totalorder %s889_s30, %s647_s7  ;;  %p649_p5 = pneg %p897_p0 }
  0x1b   : > { %s652_s16 = scalar_lea.hbm %s1044_s0, 256  ;;  %p653_p4 = scmp.lt.u32.totalorder %s889_s30, %s1044_s0 }
  0x1c   : > { %p650_p6 = pnand %p649_p5, %p648_p3  ;;  %p654_p10 = scmp.lt.u32.totalorder %s652_s16, %s647_s7 }
  0x1d   : > { %p656_p12 = scmp.lt.u32.totalorder %s647_s7, %s889_s30 }
  0x1e   : > { %p651_p7 = pneg %p650_p6  ;;  %p655_p13 = por %p654_p10, %p653_p4 }
  0x20   : > { %p657_p1 = por %p656_p12, %p655_p13 }
  0x22   : > { %p658_p2 = pnand %p657_p1, %p651_p7 }
  0x24   : > { %661 = shalt.err (!%p658_p2)
}
  0x25   : > { %s662_s20 = scalar_lea.vmem %s893_s4, 128  ;;  %s795_s28 = smov [#allocation3]  }
  0x26   : > { %p663_p3 = scmp.ne.s32.totalorder %s893_s4, %s662_s20  ;;  %s667_s29 = sshll.u32 %s795_s28, 4  ;;  %s668_s29 = int_to_ptr.vmem [resolvable:$false] %s667_s29 }
  0x27   : > { %s669_s3 = scalar_lea.vmem %s668_s29, 256  ;;  %p670_p9 = scmp.lt.s32.totalorder %s893_s4, %s668_s29 }
  0x28   : > { %p665_p6 = pnand %p663_p3, %p649_p5  ;;  %p671_p4 = scmp.lt.s32.totalorder %s669_s3, %s662_s20 }
  0x2a   : > { %p666_p11 = pneg %p665_p6  ;;  %p672_p10 = por %p671_p4, %p670_p9 }
  0x2c   : > { %p673_p12 = pnand %p672_p10, %p666_p11 }
  0x2e   : > { %676 = shalt.err (!%p673_p12)
}
  0x2f   : > { %587 = dma.hbm_to_vmem [thread:$0]  (!%p897_p0), %s889_s30, 128, %s893_s4, %s134_s6  }
  0x30   : > { %p1054_p1 = scmp.lt.s32.totalorder %s793_s14, 3  ;;  %p1055_p2 = scmp.ge.s32.totalorder %s793_s14, 1 }
  0x31   : > { %s942_s16 = scalar_lea.hbm %s1045_s1, %s565_s27  ;;  %s158_s18 = scalar_lea.vmem [#allocation6], %s549_s26 }
  0x32   : > { %p933_p7 = pnand %p1055_p2, %p1054_p1  ;;  %s168_s19 = sshll.u32 %s158_s18, 4  ;;  %s169_s19 = int_to_ptr.vmem [resolvable:$true] %s168_s19 }
  0x33   : > { %s155_s30 = scalar_lea.sflag [#allocation7], %s880_s25  ;;  %s677_s4 = scalar_lea.hbm %s942_s16, 128 }
  0x34   : > { %s1056_s7 = scalar_select %p933_p7, 1, 0 }
  0x35   : > { %p678_p9 = scmp.ne.s32.totalorder %s942_s16, %s677_s4  ;;  %s682_s27 = scalar_lea.hbm %s1045_s1, 256 }
  0x36   : > { %p683_p3 = scmp.lt.u32.totalorder %s942_s16, %s1045_s1  ;;  %p684_p6 = scmp.lt.u32.totalorder %s682_s27, %s677_s4 }
  0x37   : > { %p680_p11 = pnand %p678_p9, %p649_p5  ;;  %p686_p10 = scmp.lt.u32.totalorder %s677_s4, %s942_s16 }
  0x38   : > { %p685_p4 = por %p684_p6, %p683_p3 }
  0x39   : > { %p681_p13 = pneg %p680_p11 }
  0x3a   : > { %p687_p12 = por %p686_p10, %p685_p4 }
  0x3c   : > { %p688_p1 = pnand %p687_p12, %p681_p13 }
  0x3e   : > { %691 = shalt.err (!%p688_p1)
}
  0x3f   : > { %s692_s25 = scalar_lea.vmem %s169_s19, 128  ;;  %s796_s26 = smov [#allocation6]  }
  0x40   : > { %p693_p2 = scmp.ne.s32.totalorder %s169_s19, %s692_s25  ;;  %s697_s3 = sshll.u32 %s796_s26, 4  ;;  %s698_s3 = int_to_ptr.vmem [resolvable:$false] %s697_s3 }
  0x41   : > { %s699_s8 = scalar_lea.vmem %s698_s3, 256  ;;  %p700_p8 = scmp.lt.s32.totalorder %s169_s19, %s698_s3 }
  0x42   : > { %p695_p9 = pnand %p693_p2, %p649_p5  ;;  %p701_p7 = scmp.lt.s32.totalorder %s699_s8, %s692_s25 }
  0x44   : > { %p696_p11 = pneg %p695_p9  ;;  %p702_p3 = por %p701_p7, %p700_p8 }
  0x46   : > { %p703_p6 = pnand %p702_p3, %p696_p11 }
  0x48   : > { %706 = shalt.err (!%p703_p6)
}
  0x49   : > { %590 = dma.hbm_to_vmem [thread:$0]  (!%p897_p0), %s942_s16, 128, %s169_s19, %s155_s30  }
  0x4a   : > { %p1057_p13 = scmp.ne.s32.totalorder %s1056_s7, 0 }
  0x4b   : > { %s969_s15 = sand.u32 (!%p1057_p13), 1, %s777_s10   ;;  %p1058_p8 = scmp.ne.s32.totalorder (!%p1057_p13), %s1050_s21, 0 }
  0x4c   : > { %177 = sbr.rel (%p1057_p13) target bundleno = 757 (0x2f5), region = 28  ;;  %s972_s18 = sshll.u32 (!%p1057_p13), %s969_s15, 3 }
  0x4d   : > { %s180_s4 = scalar_lea.sflag (!%p1057_p13), [#allocation4], %s969_s15  ;;  %s183_s6 = scalar_lea.vmem (!%p1057_p13), [#allocation3], %s972_s18 }
  0x53   : > { %760 = dma.done.wait (%p1058_p8), %s180_s4, 128  }
  0x54   : > { %762 = vsyncadd (%p1058_p8), %s180_s4, 4294967168  ;;  %s189_s5 = scalar_lea.sflag [#allocation7], %s969_s15  ;;  %s192_s7 = scalar_lea.vmem [#allocation6], %s972_s18 }
  0x55   : > { %764 = dma.done.wait (%p1058_p8), %s189_s5, 128  }
  0x56   : > { %766 = vsyncadd (%p1058_p8), %s189_s5, 4294967168  ;;  %vm224_vm0 = vcmask 27648   ;;  %v797_v0 = vmov 0.0   ;;  %v226_v1 = vld [vmem:[%s183_s6] sm:$0xff]  ;;  %v227_v2 = vld [vmem:[%s192_s7] sm:$0xff]  ;;  %vm798_vm1 = vmmov 0   ;;  %v403_v22 = vlaneseq }
  0x57   : > { %225 = vst.msk [vmem:[#allocation2] sm:$0xf] %vm224_vm0, %v797_v0  ;;  %569 = vmatprep.subr.mxu1 %v797_v0  ;;  %v229_v3 = vsub.f32 %v226_v1, %v227_v2  ;;  %v228_v4 = vadd.f32 %v227_v2, %v226_v1  ;;  %571 = vmatprep.mubr.msk.f32.mxu1 %vm798_vm1, %v797_v0  ;;  %vm330_vm2 = vcmask 1043456   ;;  %vm326_vm3 = vcmask 31744   ;;  %s562_s19 = sshll.u32 %s785_s12, 7  ;;  %s217_s20 = scalar_lea.vmem [#allocation8], %s972_s18 }
  0x58   : > { %v404_v23 = vshrl.u32 %v403_v22, 7  ;;  %v406_v24 = vand.u32 127, %v403_v22  ;;  %s438_s27 = sshll.u32 %s217_s20, 4  ;;  %s995_s26 = scalar_lea.hbm %s1046_s2, %s562_s19  ;;  %s997_s27 = int_to_ptr.vmem [resolvable:$true] %s438_s27 }
  0x59   : > { %v235_v5 = vcombine.high %v229_v3, %v229_v3  ;;  %v232_v6 = vcombine.high %v228_v4, %v228_v4  ;;  %s425_s3 = scalar_lea.sflag [#allocation5], %s969_s15  ;;  %s707_s8 = scalar_lea.vmem %s997_s27, 128 }
  0x5a   : > { %vm407_vm4 = vcmp.eq.s32.totalorder %v404_v23, %v406_v24  ;;  %p708_p0 = scmp.ne.s32.totalorder %s997_s27, %s707_s8  ;;  %p1059_p5 = scmp.ne.s32.totalorder %s1051_s22, 0 }
  0x5b   : > { %237 = vmatprep.subr.mxu0 %v235_v5  ;;  %301 = vmatprep.mubr.f32.mxu0 %v232_v6  ;;  %s799_s12 = smov [#allocation8]  }
  0x5c   : > { %238 = vmatpush1.xpose.msra.mxu0 %v229_v3  ;;  %p709_p7 = pnand %p708_p0, %p1059_p5  ;;  %s711_s18 = sshll.u32 %s799_s12, 4  ;;  %s712_s18 = int_to_ptr.vmem [resolvable:$false] %s711_s18 }
  0x5d   : > { %s713_s4 = scalar_lea.vmem %s712_s18, 256  ;;  %p714_p10 = scmp.lt.s32.totalorder %s997_s27, %s712_s18 }
  0x5e   : > { %v230_v7 = vld [vmem:[#allocation2] sm:$0xf]  ;;  %p710_p4 = pneg %p709_p7  ;;  %p715_p12 = scmp.lt.s32.totalorder %s713_s4, %s707_s8 }
  0x5f   : > { %302 = vmatmul.mubr.f32.vlgmr.msra.gmra.mrb[0].mxu0 %v228_v4 }
  0x60   : > { %p716_p1 = por %p715_p12, %p714_p10 }
  0x62   : > { %p717_p2 = pnand %p716_p1, %p710_p4 }
 0x132   : > { %v303_v8 = vpop.f32.mrb[0].mxu0 }
 0x133   : > { %v307_v9 = vadd.f32 %v303_v8, %v230_v7  ;;  %v305_v10 = vpop.f32.mrb[1].mxu0 }
 0x135   : > { %309 = vst.msk [vmem:[#allocation2] sm:$0xf] %vm224_vm0, %v307_v9 }
 0x13c   : > { %v313_v11 = vld [vmem:[#allocation2] sm:$0xf] }
 0x13d   : > { %v314_v12 = vmul.f32 0.0009765625, %v313_v11 }
 0x13f   : > { %570 = vmatpush3.msk.msra.mxu1 %vm330_vm2, %v314_v12  ;;  %v315_v13 = vmul.f32 %v314_v12, %v314_v12 }
 0x140   : > { %572 = vmatmul.mubr.msk.f32.vlgmr.msra.gmra.mrb[0].mxu1 %vm326_vm3, %v314_v12 }
 0x141   : > { %v316_v14 = vsel %vm224_vm0, %v315_v13, 0.0 }
 0x142   : > { %317 = vadd.xlane.f32.xlu0 %v316_v14 }
 0x1cf   : > { %v318_v15 = vpop.xlane.xlu0 %317 }
 0x1d0   : > { %v319_v16 = vrot.slane %v318_v15, 4 }
 0x1d2   : > { %v320_v17 = vadd.f32 %v319_v16, %v318_v15 }
 0x1d4   : > { %v321_v18 = vrot.slane %v320_v17, 2 }
 0x1d6   : > { %v322_v19 = vadd.f32 %v321_v18, %v320_v17 }
 0x1d8   : > { %v323_v20 = vrot.slane %v322_v19, 1 }
 0x1da   : > { %v324_v21 = vadd.f32 %v323_v20, %v322_v19 }
 0x1dc   : > { %574 = vpush %v324_v21 }
 0x20d   : > { %s575_s21 = spop %574 }
 0x213   : > { %v399_v25 = vpop.f32.mrb[0].mxu1 }
 0x214   : > { %v408_v26 = vsel %vm407_vm4, %v399_v25, 0.0  ;;  %v573_v27 = vpop.f32.mrb[1].mxu1 }
 0x215   : > { %v409_v28 = vsel %vm224_vm0, %v408_v26, 0.0 }
 0x216   : > { %410 = vadd.xlane.f32.xlu0 %v409_v28 }
 0x2a3   : > { %v411_v29 = vpop.xlane.xlu0 %410 }
 0x2a4   : > { %v412_v30 = vrot.slane %v411_v29, 4 }
 0x2a6   : > { %v413_v31 = vadd.f32 %v412_v30, %v411_v29 }
 0x2a8   : > { %v414_v32 = vrot.slane %v413_v31, 2 }
 0x2aa   : > { %v415_v33 = vadd.f32 %v414_v32, %v413_v31 }
 0x2ac   : > { %v416_v34 = vrot.slane %v415_v33, 1 }
 0x2ae   : > { %v417_v35 = vadd.f32 %v416_v34, %v415_v33 }
 0x2b0   : > { %576 = vpush %v417_v35 }
 0x2e1   : > { %s577_s16 = spop %576 }
 0x2e2   : > { %s419_s30 = sadd.f32 %s577_s16, %s575_s21 }
 0x2e4   : > { %s420_s28 = smul.f32 0.5, %s419_s30 }
 0x2e6   : > { %v421_v36 = vstv %s420_s28 }
 0x2e7   : > { %423 = vst [vmem:[%s217_s20] sm:$0xff] %v421_v36 }
 0x2e8   : > { %720 = shalt.err (!%p717_p2)
}
 0x2e9   : > { %s721_s15 = scalar_lea.hbm %s995_s26, 128  ;;  %s725_s7 = scalar_lea.hbm %s1046_s2, 256 }
 0x2ea   : > { %p722_p9 = scmp.ne.s32.totalorder %s995_s26, %s721_s15  ;;  %p726_p6 = scmp.lt.u32.totalorder %s995_s26, %s1046_s2 }
 0x2eb   : > { %p727_p13 = scmp.lt.u32.totalorder %s725_s7, %s721_s15  ;;  %p729_p0 = scmp.lt.u32.totalorder %s721_s15, %s995_s26 }
 0x2ec   : > { %p723_p11 = pnand %p722_p9, %p1059_p5 }
 0x2ed   : > { %p728_p8 = por %p727_p13, %p726_p6 }
 0x2ee   : > { %p724_p3 = pneg %p723_p11 }
 0x2ef   : > { %p730_p7 = por %p729_p0, %p728_p8 }
 0x2f1   : > { %p731_p4 = pnand %p730_p7, %p724_p3 }
 0x2f3   : > { %734 = shalt.err (!%p731_p4)
}
 0x2f4   : > { %582 = dma.vmem_to_hbm [thread:$0]  (%p1059_p5), %s997_s27, 128, %s995_s26, %s425_s3  }
 0x2f5 PF: > { %s450_s19 = sand.u32 1, %s773_s9   ;;  %p1060_p10 = scmp.ne.s32.totalorder %s1052_s24, 0 }
 0x2f6   : > { %p1061_p12 = scmp.ge.s32.totalorder %s793_s14, 2  ;;  %s451_s30 = scalar_lea.sflag [#allocation5], %s450_s19 }
 0x2f8   : > { %p592_p1 = pnand %p1061_p12, %p1060_p10 }
 0x2fa   : > { %768 = dma.done.wait (!%p592_p1), %s451_s30, 128  }
 0x2fb   : > { %770 = vsyncadd (!%p592_p1), %s451_s30, 4294967168  ;;  %s21_s14 = sadd.s32 1, %s793_s14   ;;  %s1062_s9 = smov %s777_s10 }
 0x2fc   : > { %p18_p2 = scmp.ge.s32.totalorder %s21_s14, 4   ;;  %s1063_s10 = smov %s781_s11 }
 0x2fd   : > { %s1064_s11 = smov %s871_s23  ;;  %s1065_s12 = smov %s789_s13 }
 0x2fe   : > { %s1066_s13 = smov %s1068_s17  ;;  %20 = sbr.rel (!%p18_p2) target bundleno = 8 (0x8), region = 94 }
 0x305   :  { %456 = vsyncpa [#allocation4], 1 }
 0x306   :  { %458 = vsyncpa [#allocation4 + $0x1], 1 }
 0x307   :  { %459 = vsyncpa [#allocation7], 1 }
 0x308   :  { %461 = vsyncpa [#allocation7 + $0x1], 1 }
 0x309   :  { %462 = vsyncpa [#allocation5], 1 }
 0x30a   :  { %464 = vsyncpa [#allocation5 + $0x1], 1 }

</bundles_post_ra>
